<compile_context>
chip_gen: v7x
topology: tpu7x:2x2x1
jax: 0.10.0
libtpu: 0.0.40
codegen_flags: <defaults>
</compile_context>

<pallas_src>
import functools
import math

import jax
import jax.numpy as jnp
from jax import lax
from jax.experimental import pallas as pl
from jax.experimental.pallas import tpu as pltpu


def _label_smoothing_kernel(x_ref, tgt_ref, out_ref, *,
                            padding_idx, fill, confidence, const_term):
    x = x_ref[...]                      # (tn, Vp) float32 log-probs
    tgt = tgt_ref[...]                  # (tn, 1)  int32 labels

    tn, vp = x.shape
    col_ids = lax.broadcasted_iota(jnp.int32, (tn, vp), 1)

    # Row sum of x over the vocab axis (zero-padded lanes contribute 0).
    # TODO(synk): could be offloaded to the idle MXU via jnp.dot(x, ones((Vp,1))).
    row_sum = jnp.sum(x, axis=1, keepdims=True)                       # (tn, 1)
    # Gather x[i, tgt_i] without a scatter: iota-compare + select + lane reduce.
    x_tgt = jnp.sum(jnp.where(col_ids == tgt, x, 0.0),
                    axis=1, keepdims=True)                            # (tn, 1)
    # x[:, padding_idx] is a static single-column slice.
    x_pad = x[:, padding_idx:padding_idx + 1]                         # (tn, 1)

    per_row = (const_term
               - fill * (row_sum - x_tgt - x_pad)
               - confidence * x_tgt)
    # Rows whose target is the padding index contribute nothing.
    per_row = jnp.where(tgt != padding_idx, per_row, 0.0)
    out_ref[...] = per_row


def label_smoothing_loss(x, target, *, size, padding_idx, smoothing, tn=None):
    """x: (N, size) float log-probs; target: (N,) int labels.
    Returns the scalar sum-reduced KL divergence of the PyTorch module."""
    N, V = x.shape
    assert V == size, (V, size)
    assert size > 2, "smoothing / (size - 2) is undefined for size <= 2"
    assert 0 <= padding_idx < size

    x = x.astype(jnp.float32)
    target2d = target.astype(jnp.int32).reshape(N, 1)

    # Lane-dense vocab axis: pad to a multiple of 128 with zeros.
    vp = ((V + 127) // 128) * 128
    if vp != V:
        x = jnp.pad(x, ((0, 0), (0, vp - V)))

    # Row tile: ~2 MiB of x per block, multiple of 8 rows, never over-padding
    # tiny inputs.  Double-buffered this stays well inside 16 MiB scoped VMEM.
    if tn is None:
        tn = ((2 << 20) // (4 * vp)) // 8 * 8
        tn = max(8, min(512, tn))
    tn = max(8, (tn // 8) * 8)
    tn = min(tn, ((N + 7) // 8) * 8)

    # Pad rows so the grid tiles exactly; padded rows get target == padding_idx
    # so they contribute exactly 0 to the loss.
    n_pad = ((N + tn - 1) // tn) * tn
    if n_pad != N:
        x = jnp.pad(x, ((0, n_pad - N), (0, 0)))
        target2d = jnp.pad(target2d, ((0, n_pad - N), (0, 0)),
                           constant_values=padding_idx)

    # Hoisted scalar constants (no per-element logs in the kernel).
    fill = smoothing / (size - 2)
    confidence = 1.0 - smoothing
    fill_log_fill = fill * math.log(fill) if fill > 0.0 else 0.0
    conf_log_conf = confidence * math.log(confidence) if confidence > 0.0 else 0.0
    const_term = (size - 2) * fill_log_fill + conf_log_conf

    kernel = functools.partial(
        _label_smoothing_kernel,
        padding_idx=padding_idx, fill=fill, confidence=confidence,
        const_term=const_term)

    num_blocks = n_pad // tn
    per_row = pl.pallas_call(
        kernel,
        out_shape=jax.ShapeDtypeStruct((n_pad, 1), jnp.float32),
        grid_spec=pltpu.PrefetchScalarGridSpec(
            num_scalar_prefetch=0,
            grid=(num_blocks,),
            in_specs=[
                pl.BlockSpec((tn, vp), lambda i: (i, 0)),
                # target stays a (tn, 1) VMEM block: the kernel needs it as a
                # vector for the lane compare; its tiny DMA is amortized by tn.
                pl.BlockSpec((tn, 1), lambda i: (i, 0)),
            ],
            out_specs=pl.BlockSpec((tn, 1), lambda i: (i, 0)),
        ),
        compiler_params=pltpu.CompilerParams(
            # Every block writes independent per-row partials (no carried
            # accumulator) -> parallel grid; both TensorCores on v7x.
            dimension_semantics=("parallel",)),
    )(x, target2d)

    # Final reduction in f32 outside the kernel (padded rows are exactly 0).
    return jnp.sum(per_row)


def _reference(x, target, *, size, padding_idx, smoothing):
    """Pure-JAX reference mirroring the PyTorch module."""
    N, V = x.shape
    fill = smoothing / (size - 2)
    confidence = 1.0 - smoothing
    td = jnp.full((N, V), fill, dtype=jnp.float32)
    td = td.at[jnp.arange(N), target].set(confidence)
    td = td.at[:, padding_idx].set(0.0)
    td = jnp.where((target == padding_idx)[:, None], 0.0, td)
    term = jnp.where(td > 0.0, td * (jnp.log(jnp.maximum(td, 1e-30)) - x), 0.0)
    return jnp.sum(term)


if __name__ == "__main__":
    key = jax.random.PRNGKey(0)
    cases = [
        dict(N=16, V=32, padding_idx=0, smoothing=0.1),          # lane padding
        dict(N=40, V=256, padding_idx=3, smoothing=0.2),         # row padding
        dict(N=48, V=64, padding_idx=1, smoothing=0.1, tn=16),   # multi-block grid
    ]
    for cfg in cases:
        N, V = cfg["N"], cfg["V"]
        key, k1, k2 = jax.random.split(key, 3)
        logits = jax.random.normal(k1, (N, V), dtype=jnp.float32)
        x = jax.nn.log_softmax(logits, axis=-1)     # KLDivLoss expects log-probs
        target = jax.random.randint(k2, (N,), 0, V, dtype=jnp.int32)
        # Force padded positions to exercise the row-masking path.
        target = target.at[3].set(cfg["padding_idx"])
        target = target.at[N - 2].set(cfg["padding_idx"])

        loss = label_smoothing_loss(
            x, target, size=V, padding_idx=cfg["padding_idx"],
            smoothing=cfg["smoothing"], tn=cfg.get("tn"))
        loss = jax.block_until_ready(loss)

        ref = _reference(x, target, size=V, padding_idx=cfg["padding_idx"],
                         smoothing=cfg["smoothing"])
        assert jnp.allclose(loss, ref, rtol=1e-5, atol=1e-4), (cfg, loss, ref)

    print("KERNEL_OK")
</pallas_src>

<mosaic_0001>
module attributes {stable_mosaic.version = 11 : i64} {
  func.func @_label_smoothing_kernel(%arg0: i32, %arg1: memref<16x128xf32, #tpu.memory_space<vmem>>, %arg2: memref<16x1xi32, #tpu.memory_space<vmem>>, %arg3: memref<16x1xf32, #tpu.memory_space<vmem>>) attributes {dimension_semantics = [#tpu.dimension_semantics<parallel>], iteration_bounds = array<i64: 1>, scalar_prefetch = 0 : i64, scratch_operands = 0 : i64, tpu.core_type = #tpu.core_type<tc>, window_params = [{transform_indices = @transform_0, window_bounds = array<i64: 16, 128>}, {transform_indices = @transform_1, window_bounds = array<i64: 16, 1>}, {transform_indices = @transform_2, window_bounds = array<i64: 16, 1>}]} {
    %c0 = arith.constant 0 : index
    %c0_0 = arith.constant 0 : index
    %0 = vector.load %arg1[%c0, %c0_0] : memref<16x128xf32, #tpu.memory_space<vmem>>, vector<16x128xf32>
    %c0_1 = arith.constant 0 : index
    %c0_2 = arith.constant 0 : index
    %1 = vector.load %arg2[%c0_1, %c0_2] : memref<16x1xi32, #tpu.memory_space<vmem>>, vector<16x1xi32>
    %2 = tpu.iota {dimensions = array<i32: 1>} : vector<16x128xi32>
    %cst = arith.constant dense<0.000000e+00> : vector<16xf32>
    %3 = vector.multi_reduction <add>, %0, %cst [1] : vector<16x128xf32> to vector<16xf32>
    %4 = vector.shape_cast %3 : vector<16xf32> to vector<16x1xf32>
    %5 = vector.broadcast %1 : vector<16x1xi32> to vector<16x128xi32>
    %6 = arith.cmpi eq, %2, %5 : vector<16x128xi32>
    %cst_3 = arith.constant 0.000000e+00 : f32
    %7 = vector.broadcast %cst_3 : f32 to vector<16x128xf32>
    %8 = arith.select %6, %0, %7 : vector<16x128xi1>, vector<16x128xf32>
    %cst_4 = arith.constant dense<0.000000e+00> : vector<16xf32>
    %9 = vector.multi_reduction <add>, %8, %cst_4 [1] : vector<16x128xf32> to vector<16xf32>
    %10 = vector.shape_cast %9 : vector<16xf32> to vector<16x1xf32>
    %11 = vector.extract_strided_slice %0 {offsets = [0, 0], sizes = [16, 1], strides = [1, 1]} : vector<16x128xf32> to vector<16x1xf32>
    %12 = arith.subf %4, %10 : vector<16x1xf32>
    %13 = arith.subf %12, %11 : vector<16x1xf32>
    %cst_5 = arith.constant 0.00333333341 : f32
    %14 = vector.broadcast %cst_5 : f32 to vector<16x1xf32>
    %15 = arith.mulf %14, %13 : vector<16x1xf32>
    %cst_6 = arith.constant -0.665202737 : f32
    %16 = vector.broadcast %cst_6 : f32 to vector<16x1xf32>
    %17 = arith.subf %16, %15 : vector<16x1xf32>
    %cst_7 = arith.constant 0.899999976 : f32
    %18 = vector.broadcast %cst_7 : f32 to vector<16x1xf32>
    %19 = arith.mulf %18, %10 : vector<16x1xf32>
    %20 = arith.subf %17, %19 : vector<16x1xf32>
    %c0_i32 = arith.constant 0 : i32
    %21 = vector.broadcast %c0_i32 : i32 to vector<16x1xi32>
    %22 = arith.cmpi ne, %1, %21 : vector<16x1xi32>
    %cst_8 = arith.constant 0.000000e+00 : f32
    %23 = vector.broadcast %cst_8 : f32 to vector<16x1xf32>
    %24 = arith.select %22, %20, %23 : vector<16x1xi1>, vector<16x1xf32>
    %c0_9 = arith.constant 0 : index
    %c0_10 = arith.constant 0 : index
    %25 = vector.load %arg3[%c0_9, %c0_10] : memref<16x1xf32, #tpu.memory_space<vmem>>, vector<16x1xf32>
    tpu.vector_store %arg3[%c0_9, %c0_10], %24 {strides = array<i32>} : memref<16x1xf32, #tpu.memory_space<vmem>>, vector<16x1xf32>,
    return
  }
  func.func @transform_0(%arg0: i32) -> (i32, i32) {
    %c0_i32 = arith.constant 0 : i32
    %c0_i32_0 = arith.constant 0 : i32
    return %arg0, %c0_i32 : i32, i32
  }
  func.func @transform_1(%arg0: i32) -> (i32, i32) {
    %c0_i32 = arith.constant 0 : i32
    %c0_i32_0 = arith.constant 0 : i32
    return %arg0, %c0_i32 : i32, i32
  }
  func.func @transform_2(%arg0: i32) -> (i32, i32) {
    %c0_i32 = arith.constant 0 : i32
    %c0_i32_0 = arith.constant 0 : i32
    return %arg0, %c0_i32 : i32, i32
  }
}

</mosaic_0001>

<bundles_post_ra>
// kernel: tpu_custom_call.1
= control target key start
LH: loop header
LB: loop body
LE: loop exit
PB: predicated region body
PF: predicated region fallthrough
CT: control target
= control target key end

     0   :  { %v60_v0 = vmov 0   ;;  %v15_v5 = vlaneseq  ;;  %vm51_vm3 = vcmask 7168   ;;  %s94_s1 = inlined_call_operand.vmem [shape: s32[16,1], index: 1, kind: input, shape index: {}]   ;;  %s95_s0 = inlined_call_operand.vmem [shape: f32[16,128], index: 0, kind: input, shape index: {}]   ;;  %s96_s2 = inlined_call_operand.vmem [shape: f32[16,1], index: 2, kind: output, shape index: {}]  }
   0x1   :  { %59 = vset.pattern.permute.xlu0 %v60_v0  ;;  %v13_v1 = vld [vmem:[%s94_s1] sm:$0xff]  ;;  %v14_v3 = vld [vmem:[%s94_s1 + $0x8] sm:$0xff] }
   0x2   :  { %v11_v2 = vld [vmem:[%s95_s0] sm:$0xff]  ;;  %22 = vperm.xlu0 %59, %v13_v1   ;;  %v12_v4 = vld [vmem:[%s95_s0 + $0x8] sm:$0xff]  ;;  %v16_v6 = vand.u32 127, %v15_v5  ;;  %vm47_vm2 = vcmp.ne.s32.totalorder %v13_v1, 0  ;;  %vm48_vm4 = vcmp.ne.s32.totalorder %v14_v3, 0 }
   0x3   :  { %17 = vadd.xlane.f32.xlu1 %v11_v2 }
   0x6   :  { %25 = vperm.xlu0 %59, %v14_v3  }
   0x7   :  { %19 = vadd.xlane.f32.xlu1 %v12_v4 }
  0x81   :  { %v23_v7 = vpop.permute.xlu0 %22 }
  0x82   :  { %vm27_vm0 = vcmp.eq.s32.totalorder %v16_v6, %v23_v7 }
  0x83   :  { %v29_v8 = vsel %vm27_vm0, %v11_v2, 0.0 }
  0x84   :  { %31 = vadd.xlane.f32.xlu0 %v29_v8 }
  0x85   :  { %v26_v9 = vpop.permute.xlu0 %25 }
  0x86   :  { %vm28_vm1 = vcmp.eq.s32.totalorder %v16_v6, %v26_v9 }
  0x87   :  { %v30_v10 = vsel %vm28_vm1, %v12_v4, 0.0 }
  0x88   :  { %33 = vadd.xlane.f32.xlu1 %v30_v10 }
  0x90   :  { %v18_v11 = vpop.xlane.xlu1 %17 }
  0x94   :  { %v20_v12 = vpop.xlane.xlu1 %19 }
 0x111   :  { %v32_v13 = vpop.xlane.xlu0 %31 }
 0x112   :  { %v35_v14 = vsub.f32 %v18_v11, %v32_v13  ;;  %v43_v20 = vmul.f32 0.9, %v32_v13 }
 0x114   :  { %v37_v15 = vsub.f32 %v35_v14, %v11_v2 }
 0x115   :  { %v34_v16 = vpop.xlane.xlu1 %33 }
 0x116   :  { %v39_v17 = vmul.f32 0.0033333334, %v37_v15  ;;  %v36_v18 = vsub.f32 %v20_v12, %v34_v16  ;;  %v44_v26 = vmul.f32 0.9, %v34_v16 }
 0x118   :  { %v41_v19 = vsub.f32 -0.66520274, %v39_v17  ;;  %v38_v21 = vsub.f32 %v36_v18, %v12_v4 }
 0x11a   :  { %v45_v22 = vsub.f32 %v41_v19, %v43_v20  ;;  %v40_v23 = vmul.f32 0.0033333334, %v38_v21 }
 0x11c   :  { %v49_v24 = vsel %vm47_vm2, %v45_v22, 0.0  ;;  %v42_v25 = vsub.f32 -0.66520274, %v40_v23 }
 0x11d   :  { %52 = vst.msk [vmem:[%s96_s2] sm:$0xff] %vm51_vm3, %v49_v24 }
 0x11e   :  { %v46_v27 = vsub.f32 %v42_v25, %v44_v26 }
 0x120   :  { %v50_v28 = vsel %vm48_vm4, %v46_v27, 0.0 }
 0x121   :  { %53 = vst.msk [vmem:[%s96_s2 + $0x8] sm:$0xff] %vm51_vm3, %v50_v28 }

</bundles_post_ra>
